<compile_context>
chip_gen: v7x
topology: tpu7x:2x2x1
jax: 0.10.0
libtpu: 0.0.40
codegen_flags: <defaults>
</compile_context>

<pallas_src>
import functools

import jax
import jax.numpy as jnp
from jax.experimental import pallas as pl
from jax.experimental.pallas import tpu as pltpu

_MIB = 1024 * 1024


def _round_up(x, m):
    return ((x + m - 1) // m) * m


def _hsic_kernel(*refs, n_rows, d1_true, d2_true, external_norms, use_bf16):
    if external_norms:
        a1_ref, a2_ref, inv2_ref = refs[:3]
        out_ref, acc_s_ref, acc_u1_ref, acc_u2_ref = refs[3:]
    else:
        a1_ref, a2_ref = refs[:2]
        inv2_ref = None
        out_ref, acc_s_ref, acc_u1_ref, acc_u2_ref = refs[2:]

    i = pl.program_id(1)  # batch (reduction) axis — innermost grid axis

    @pl.when(i == 0)
    def _init():
        acc_s_ref[...] = jnp.zeros_like(acc_s_ref)
        acc_u1_ref[...] = jnp.zeros_like(acc_u1_ref)
        acc_u2_ref[...] = jnp.zeros_like(acc_u2_ref)

    eps = jnp.float32(1e-6)
    a1 = a1_ref[...].astype(jnp.float32)          # (TB, D1p)
    a2 = a2_ref[...].astype(jnp.float32)          # (TB, TN)

    # Row norm of (a + eps) over the ORIGINAL feature columns, evaluated on the
    # zero-padded tile:
    #   sum_orig (a+eps)^2 == sum_padded (a*a + 2*eps*a) + D_orig*eps^2
    # (padded columns have a == 0, so they drop out of the data terms).
    sq1 = (jnp.sum(a1 * a1 + (2.0 * eps) * a1, axis=1, keepdims=True)
           + jnp.float32(d1_true) * eps * eps)
    a1n = a1 * jax.lax.rsqrt(sq1)

    if external_norms:
        # D2 is tiled: the full-row norm of a2 was precomputed in the wrapper.
        a2n = a2 * inv2_ref[...].astype(jnp.float32)
    else:
        sq2 = (jnp.sum(a2 * a2 + (2.0 * eps) * a2, axis=1, keepdims=True)
               + jnp.float32(d2_true) * eps * eps)
        a2n = a2 * jax.lax.rsqrt(sq2)

    # bf16 MXU operands in the compute-bound regime; accumulation stays f32.
    lhs = a1n.astype(jnp.bfloat16) if use_bf16 else a1n
    rhs = a2n.astype(jnp.bfloat16) if use_bf16 else a2n

    # S += A1n_tile^T @ A2n_tile (contract the batch dim; no explicit .T),
    # plus the column sums needed for the centering correction.
    acc_s_ref[...] += jax.lax.dot_general(
        lhs, rhs, (((0,), (0,)), ((), ())),
        preferred_element_type=jnp.float32)                       # (D1p, TN)
    acc_u1_ref[...] += jnp.sum(a1n, axis=0, keepdims=True)        # (1, D1p)
    acc_u2_ref[...] += jnp.sum(a2n, axis=0, keepdims=True)        # (1, TN)

    @pl.when(i == pl.num_programs(1) - 1)
    def _finalize():
        inv_n = jnp.float32(1.0 / n_rows)
        u1 = acc_u1_ref[...]
        u2 = acc_u2_ref[...]
        # Outer product u1^T u2 via a K=1 contraction (same dot pattern as the
        # accumulate, no (D1,1) relayout), then form the centered matrix
        # EXPLICITLY to avoid the catastrophic cancellation of the fully
        # expanded Frobenius norm.
        outer = jax.lax.dot_general(
            u1, u2, (((0,), (0,)), ((), ())),
            preferred_element_type=jnp.float32)                   # (D1p, TN)
        t = acc_s_ref[...] - inv_n * outer
        val = jnp.sum(t * t) * inv_n
        # Lane-dense (1,128) output block per D2-tile; wrapper reads lane 0.
        out_ref[...] = jnp.full(out_ref.shape, val, dtype=out_ref.dtype)


def _plan(B, D1, D2, itemsize, max_acc_bytes=None, max_tb=None):
    """Pick padded dims, D2/ batch tiles, and the VMEM limit."""
    d1p = _round_up(D1, 8)       # sublane dim of the S accumulator
    d2p = _round_up(D2, 128)     # lane dim of a2 blocks and of S

    try:
        vmem_cap = int(pltpu.get_tpu_info().vmem_capacity_bytes)
    except Exception:  # pragma: no cover - conservative fallback (v7x per-TC)
        vmem_cap = 64 * _MIB
    budget = vmem_cap * 3 // 4   # headroom for compiler-internal scratch

    # --- S-accumulator tiling along D2 (only when the full (d1p,d2p) f32
    # accumulator would hog VMEM; generation-aware via the queried capacity).
    acc_cap = min(budget // 3, 16 * _MIB)
    if max_acc_bytes is not None:
        acc_cap = min(acc_cap, max_acc_bytes)
    if 4 * d1p * d2p <= acc_cap:
        tn, n_d2 = d2p, 1
    else:
        tn = max(128, (acc_cap // (4 * d1p)) // 128 * 128)
        n_d2 = -(-d2p // tn)
        d2p = n_d2 * tn          # pad D2 so the D2 blocks are uniform
    # TODO(synk): if D1 alone is so large that a single (d1p, 128) accumulator
    # block exceeds the budget, D1 would also need a grid axis (needs
    # partial-u1 handling); not implemented.
    external_norms = n_d2 > 1    # a2 row norms cannot be formed per D2-block

    # --- batch tile: target a ~2-8 MiB (a1, a2) block pair, VMEM-bounded,
    # sublane multiple dtype-aware (8 for f32, 16 for bf16, 32 for 8-bit).
    sub = 8 if itemsize >= 4 else (16 if itemsize == 2 else 32)
    row_bytes = itemsize * (d1p + tn) + (4 if external_norms else 0)
    acc_bytes = 4 * (d1p * tn + d1p + tn)
    pair_cap = max((budget - acc_bytes) // 2, 512 * 1024)   # double-buffered
    pair_bytes = min(8 * _MIB, pair_cap)
    tb = max(sub, min(4096, pair_bytes // row_bytes))
    if max_tb is not None:
        tb = max(sub, min(tb, max_tb))
    tb = (tb // sub) * sub
    if B <= tb:
        tb = _round_up(B, sub)
    bp = _round_up(B, tb)        # zero-pad B instead of requiring exact divisors
    n_b = bp // tb

    vmem_limit = acc_bytes + 2 * tb * row_bytes + 4 * _MIB
    vmem_limit = min(max(vmem_limit, 32 * _MIB), int(vmem_cap * 0.9))

    return dict(d1p=d1p, d2p=d2p, tn=tn, n_d2=n_d2, tb=tb, bp=bp, n_b=n_b,
                external_norms=external_norms, vmem_limit=vmem_limit)


def _pad2(x, rows, cols):
    r, c = x.shape
    if r == rows and c == cols:
        return x
    return jnp.pad(x, ((0, rows - r), (0, cols - c)))


def hsic(attention1, attention2, *, _max_acc_bytes=None, _max_tb=None):
    """HSIC forward. attention1: (B, D1), attention2: (B, D2). Returns f32 scalar."""
    a1 = jnp.asarray(attention1)
    a2 = jnp.asarray(attention2)
    B, D1 = a1.shape
    B2, D2 = a2.shape
    assert B == B2, "batch dims must match"

    itemsize = jnp.dtype(a1.dtype).itemsize
    p = _plan(B, D1, D2, itemsize, max_acc_bytes=_max_acc_bytes, max_tb=_max_tb)
    d1p, d2p, tn, n_d2 = p["d1p"], p["d2p"], p["tn"], p["n_d2"]
    tb, bp, n_b = p["tb"], p["bp"], p["n_b"]
    external_norms = p["external_norms"]

    # bf16 MXU operands only when clearly compute-bound (or already bf16).
    use_bf16 = (a1.dtype == jnp.bfloat16) or (min(D1, D2) >= 1024)

    inputs = [_pad2(a1, bp, d1p), _pad2(a2, bp, d2p)]
    # TODO(synk): sweep pipeline_mode=pl.Buffered(3) on these input specs if
    # xprof shows exposed DMA at the start of each grid step.
    in_specs = [
        pl.BlockSpec((tb, d1p), lambda j, i: (i, 0)),
        pl.BlockSpec((tb, tn), lambda j, i: (i, j)),
    ]
    if external_norms:
        # Full-row norms of a2 cannot be formed inside a D2-tiled kernel; this
        # O(B*D2) pre-pass only runs in the compute-bound (large-D) regime.
        inv2 = jax.lax.rsqrt(
            jnp.sum(jnp.square(a2.astype(jnp.float32) + jnp.float32(1e-6)),
                    axis=1, keepdims=True))
        inputs.append(_pad2(inv2, bp, 1))
        in_specs.append(pl.BlockSpec((tb, 1), lambda j, i: (i, 0)))

    kernel = functools.partial(
        _hsic_kernel, n_rows=B, d1_true=D1, d2_true=D2,
        external_norms=external_norms, use_bf16=use_bf16)

    cost = pl.CostEstimate(
        flops=2 * bp * d1p * d2p + 2 * d1p * d2p,
        transcendentals=2 * bp,
        bytes_accessed=itemsize * bp * (n_d2 * d1p + d2p) + 4 * n_d2 * 128)

    # Grid: (D2 blocks, batch blocks); batch is the reduction axis (innermost,
    # "arbitrary"), D2 blocks are independent ("parallel" -> v7x 2-TC split in
    # the compute-bound regime; when n_d2 == 1 a batch-split per core would be
    # the only further 2-TC option and would regress the HBM-bound case).
    out = pl.pallas_call(
        kernel,
        out_shape=jax.ShapeDtypeStruct((1, n_d2 * 128), jnp.float32),
        grid_spec=pltpu.PrefetchScalarGridSpec(
            num_scalar_prefetch=0,
            grid=(n_d2, n_b),
            in_specs=in_specs,
            out_specs=pl.BlockSpec((1, 128), lambda j, i: (0, j)),
            scratch_shapes=[
                pltpu.VMEM((d1p, tn), jnp.float32),   # S accumulator block
                pltpu.VMEM((1, d1p), jnp.float32),    # column sums of A1n
                pltpu.VMEM((1, tn), jnp.float32),     # column sums of A2n block
            ],
        ),
        compiler_params=pltpu.CompilerParams(
            dimension_semantics=("parallel", "arbitrary"),
            vmem_limit_bytes=p["vmem_limit"]),
        cost_estimate=cost,
    )(*inputs)

    partials = out[0, ::128]     # one scalar per D2 block
    return jnp.sum(partials)


def _hsic_reference(a1, a2):
    """Pure-JAX reference mirroring the PyTorch forward exactly."""
    eps = 1e-6
    B = a1.shape[0]
    m1 = jnp.linalg.norm(a1 + eps, axis=1, keepdims=True)
    m2 = jnp.linalg.norm(a2 + eps, axis=1, keepdims=True)
    a1n = a1 / m1
    a2n = a2 / m2
    H = jnp.eye(B, dtype=jnp.float32) - 1.0 / B
    k1 = a1n @ a1n.T
    k2 = a2n @ a2n.T
    return jnp.trace(H @ k1 @ H @ k2) / B


if __name__ == "__main__":
    key = jax.random.PRNGKey(0)
    k1, k2, k3, k4 = jax.random.split(key, 4)

    # Case 1: small shapes, single-D2-block fast path (lane padding 64 -> 128).
    B, D1, D2 = 8, 32, 64
    att1 = jax.random.normal(k1, (B, D1), dtype=jnp.float32)
    att2 = jax.random.normal(k2, (B, D2), dtype=jnp.float32)
    res1 = jax.block_until_ready(hsic(att1, att2))
    ref1 = jax.block_until_ready(_hsic_reference(att1, att2))
    assert jnp.allclose(res1, ref1, rtol=1e-4, atol=1e-6), (res1, ref1)

    # Case 2: force the D2-tiled / multi-batch-tile path (awkward widths,
    # padded batch, wrapper-side a2 norms) and validate it too.
    B, D1, D2 = 44, 20, 200
    att1 = jax.random.normal(k3, (B, D1), dtype=jnp.float32)
    att2 = jax.random.normal(k4, (B, D2), dtype=jnp.float32)
    res2 = jax.block_until_ready(
        hsic(att1, att2, _max_acc_bytes=16 * 1024, _max_tb=16))
    ref2 = jax.block_until_ready(_hsic_reference(att1, att2))
    assert jnp.allclose(res2, ref2, rtol=1e-4, atol=1e-6), (res2, ref2)

    print("KERNEL_OK")
</pallas_src>

<mosaic_0001>
module attributes {stable_mosaic.version = 11 : i64} {
  func.func @_hsic_kernel(%arg0: i32, %arg1: i32, %arg2: memref<8x32xf32, #tpu.memory_space<vmem>>, %arg3: memref<8x128xf32, #tpu.memory_space<vmem>>, %arg4: memref<1x128xf32, #tpu.memory_space<vmem>>, %arg5: memref<32x128xf32, #tpu.memory_space<vmem>>, %arg6: memref<1x32xf32, #tpu.memory_space<vmem>>, %arg7: memref<1x128xf32, #tpu.memory_space<vmem>>) attributes {dimension_semantics = [#tpu.dimension_semantics<parallel>, #tpu.dimension_semantics<arbitrary>], iteration_bounds = array<i64: 1, 1>, scalar_prefetch = 0 : i64, scratch_operands = 3 : i64, tpu.core_type = #tpu.core_type<tc>, window_params = [{transform_indices = @transform_0, window_bounds = array<i64: 8, 32>}, {transform_indices = @transform_1, window_bounds = array<i64: 8, 128>}, {transform_indices = @transform_2, window_bounds = array<i64: 1, 128>}]} {
    %c0_i32 = arith.constant 0 : i32
    %0 = arith.cmpi eq, %arg1, %c0_i32 : i32
    %1 = arith.extui %0 : i1 to i32
    %c0_i32_0 = arith.constant 0 : i32
    %2 = arith.cmpi ne, %1, %c0_i32_0 : i32
    scf.if %2 {
      %cst_32 = arith.constant 0.000000e+00 : f32
      %50 = vector.broadcast %cst_32 : f32 to vector<32x128xf32>
      %c0_33 = arith.constant 0 : index
      %c0_34 = arith.constant 0 : index
      %51 = vector.load %arg5[%c0_33, %c0_34] : memref<32x128xf32, #tpu.memory_space<vmem>>, vector<32x128xf32>
      tpu.vector_store %arg5[%c0_33, %c0_34], %50 {strides = array<i32>} : memref<32x128xf32, #tpu.memory_space<vmem>>, vector<32x128xf32>,
      %cst_35 = arith.constant 0.000000e+00 : f32
      %52 = vector.broadcast %cst_35 : f32 to vector<1x32xf32>
      %c0_36 = arith.constant 0 : index
      %c0_37 = arith.constant 0 : index
      %53 = vector.load %arg6[%c0_36, %c0_37] : memref<1x32xf32, #tpu.memory_space<vmem>>, vector<1x32xf32>
      tpu.vector_store %arg6[%c0_36, %c0_37], %52 {strides = array<i32>} : memref<1x32xf32, #tpu.memory_space<vmem>>, vector<1x32xf32>,
      %cst_38 = arith.constant 0.000000e+00 : f32
      %54 = vector.broadcast %cst_38 : f32 to vector<1x128xf32>
      %c0_39 = arith.constant 0 : index
      %c0_40 = arith.constant 0 : index
      %55 = vector.load %arg7[%c0_39, %c0_40] : memref<1x128xf32, #tpu.memory_space<vmem>>, vector<1x128xf32>
      tpu.vector_store %arg7[%c0_39, %c0_40], %54 {strides = array<i32>} : memref<1x128xf32, #tpu.memory_space<vmem>>, vector<1x128xf32>,
    } else {
    }
    %c0 = arith.constant 0 : index
    %c0_1 = arith.constant 0 : index
    %3 = vector.load %arg2[%c0, %c0_1] : memref<8x32xf32, #tpu.memory_space<vmem>>, vector<8x32xf32>
    %c0_2 = arith.constant 0 : index
    %c0_3 = arith.constant 0 : index
    %4 = vector.load %arg3[%c0_2, %c0_3] : memref<8x128xf32, #tpu.memory_space<vmem>>, vector<8x128xf32>
    %5 = arith.mulf %3, %3 : vector<8x32xf32>
    %cst = arith.constant 2.000000e+00 : f32
    %cst_4 = arith.constant 9.99999997E-7 : f32
    %6 = arith.mulf %cst, %cst_4 : f32
    %7 = vector.broadcast %6 : f32 to vector<8x32xf32>
    %8 = arith.mulf %7, %3 : vector<8x32xf32>
    %9 = arith.addf %5, %8 : vector<8x32xf32>
    %cst_5 = arith.constant dense<0.000000e+00> : vector<8xf32>
    %10 = vector.multi_reduction <add>, %9, %cst_5 [1] : vector<8x32xf32> to vector<8xf32>
    %11 = vector.shape_cast %10 : vector<8xf32> to vector<8x1xf32>
    %cst_6 = arith.constant 3.200000e+01 : f32
    %cst_7 = arith.constant 9.99999997E-7 : f32
    %12 = arith.mulf %cst_6, %cst_7 : f32
    %cst_8 = arith.constant 9.99999997E-7 : f32
    %13 = arith.mulf %12, %cst_8 : f32
    %14 = vector.broadcast %13 : f32 to vector<8x1xf32>
    %15 = arith.addf %11, %14 : vector<8x1xf32>
    %16 = math.rsqrt %15 : vector<8x1xf32>
    %17 = vector.broadcast %16 : vector<8x1xf32> to vector<8x32xf32>
    %18 = arith.mulf %3, %17 : vector<8x32xf32>
    %19 = arith.mulf %4, %4 : vector<8x128xf32>
    %cst_9 = arith.constant 2.000000e+00 : f32
    %cst_10 = arith.constant 9.99999997E-7 : f32
    %20 = arith.mulf %cst_9, %cst_10 : f32
    %21 = vector.broadcast %20 : f32 to vector<8x128xf32>
    %22 = arith.mulf %21, %4 : vector<8x128xf32>
    %23 = arith.addf %19, %22 : vector<8x128xf32>
    %cst_11 = arith.constant dense<0.000000e+00> : vector<8xf32>
    %24 = vector.multi_reduction <add>, %23, %cst_11 [1] : vector<8x128xf32> to vector<8xf32>
    %25 = vector.shape_cast %24 : vector<8xf32> to vector<8x1xf32>
    %cst_12 = arith.constant 6.400000e+01 : f32
    %cst_13 = arith.constant 9.99999997E-7 : f32
    %26 = arith.mulf %cst_12, %cst_13 : f32
    %cst_14 = arith.constant 9.99999997E-7 : f32
    %27 = arith.mulf %26, %cst_14 : f32
    %28 = vector.broadcast %27 : f32 to vector<8x1xf32>
    %29 = arith.addf %25, %28 : vector<8x1xf32>
    %30 = math.rsqrt %29 : vector<8x1xf32>
    %31 = vector.broadcast %30 : vector<8x1xf32> to vector<8x128xf32>
    %32 = arith.mulf %4, %31 : vector<8x128xf32>
    %c0_15 = arith.constant 0 : index
    %c0_16 = arith.constant 0 : index
    %33 = vector.load %arg5[%c0_15, %c0_16] : memref<32x128xf32, #tpu.memory_space<vmem>>, vector<32x128xf32>
    %cst_17 = arith.constant dense<0.000000e+00> : vector<32x128xf32>
    %34 = tpu.matmul %18, %32, %cst_17 {dimension_numbers = #tpu.dot_dimension_numbers<[0], [0], [1], [1], [0, 1, 1, 1], [], []>} : vector<8x32xf32>, vector<8x128xf32>, vector<32x128xf32> -> vector<32x128xf32>
    %35 = arith.addf %33, %34 : vector<32x128xf32>
    %c0_18 = arith.constant 0 : index
    %c0_19 = arith.constant 0 : index
    %36 = vector.load %arg5[%c0_18, %c0_19] : memref<32x128xf32, #tpu.memory_space<vmem>>, vector<32x128xf32>
    tpu.vector_store %arg5[%c0_18, %c0_19], %35 {strides = array<i32>} : memref<32x128xf32, #tpu.memory_space<vmem>>, vector<32x128xf32>,
    %c0_20 = arith.constant 0 : index
    %c0_21 = arith.constant 0 : index
    %37 = vector.load %arg6[%c0_20, %c0_21] : memref<1x32xf32, #tpu.memory_space<vmem>>, vector<1x32xf32>
    %cst_22 = arith.constant dense<0.000000e+00> : vector<32xf32>
    %38 = vector.multi_reduction <add>, %18, %cst_22 [0] : vector<8x32xf32> to vector<32xf32>
    %39 = vector.shape_cast %38 : vector<32xf32> to vector<1x32xf32>
    %40 = arith.addf %37, %39 : vector<1x32xf32>
    %c0_23 = arith.constant 0 : index
    %c0_24 = arith.constant 0 : index
    %41 = vector.load %arg6[%c0_23, %c0_24] : memref<1x32xf32, #tpu.memory_space<vmem>>, vector<1x32xf32>
    tpu.vector_store %arg6[%c0_23, %c0_24], %40 {strides = array<i32>} : memref<1x32xf32, #tpu.memory_space<vmem>>, vector<1x32xf32>,
    %c0_25 = arith.constant 0 : index
    %c0_26 = arith.constant 0 : index
    %42 = vector.load %arg7[%c0_25, %c0_26] : memref<1x128xf32, #tpu.memory_space<vmem>>, vector<1x128xf32>
    %cst_27 = arith.constant dense<0.000000e+00> : vector<128xf32>
    %43 = vector.multi_reduction <add>, %32, %cst_27 [0] : vector<8x128xf32> to vector<128xf32>
    %44 = vector.shape_cast %43 : vector<128xf32> to vector<1x128xf32>
    %45 = arith.addf %42, %44 : vector<1x128xf32>
    %c0_28 = arith.constant 0 : index
    %c0_29 = arith.constant 0 : index
    %46 = vector.load %arg7[%c0_28, %c0_29] : memref<1x128xf32, #tpu.memory_space<vmem>>, vector<1x128xf32>
    tpu.vector_store %arg7[%c0_28, %c0_29], %45 {strides = array<i32>} : memref<1x128xf32, #tpu.memory_space<vmem>>, vector<1x128xf32>,
    %c0_i32_30 = arith.constant 0 : i32
    %47 = arith.cmpi eq, %arg1, %c0_i32_30 : i32
    %48 = arith.extui %47 : i1 to i32
    %c0_i32_31 = arith.constant 0 : i32
    %49 = arith.cmpi ne, %48, %c0_i32_31 : i32
    scf.if %49 {
      %c0_32 = arith.constant 0 : index
      %c0_33 = arith.constant 0 : index
      %50 = vector.load %arg6[%c0_32, %c0_33] : memref<1x32xf32, #tpu.memory_space<vmem>>, vector<1x32xf32>
      %c0_34 = arith.constant 0 : index
      %c0_35 = arith.constant 0 : index
      %51 = vector.load %arg7[%c0_34, %c0_35] : memref<1x128xf32, #tpu.memory_space<vmem>>, vector<1x128xf32>
      %cst_36 = arith.constant dense<0.000000e+00> : vector<32x128xf32>
      %52 = tpu.matmul %50, %51, %cst_36 {dimension_numbers = #tpu.dot_dimension_numbers<[0], [0], [1], [1], [0, 1, 1, 1], [], []>} : vector<1x32xf32>, vector<1x128xf32>, vector<32x128xf32> -> vector<32x128xf32>
      %c0_37 = arith.constant 0 : index
      %c0_38 = arith.constant 0 : index
      %53 = vector.load %arg5[%c0_37, %c0_38] : memref<32x128xf32, #tpu.memory_space<vmem>>, vector<32x128xf32>
      %cst_39 = arith.constant 1.250000e-01 : f32
      %54 = vector.broadcast %cst_39 : f32 to vector<32x128xf32>
      %55 = arith.mulf %54, %52 : vector<32x128xf32>
      %56 = arith.subf %53, %55 : vector<32x128xf32>
      %57 = arith.mulf %56, %56 : vector<32x128xf32>
      %58 = vector.shape_cast %57 : vector<32x128xf32> to vector<1x32x128xf32>
      %cst_40 = arith.constant dense<0.000000e+00> : vector<1xf32>
      %59 = vector.multi_reduction <add>, %58, %cst_40 [1, 2] : vector<1x32x128xf32> to vector<1xf32>
      %60 = vector.shape_cast %59 : vector<1xf32> to vector<1x1x1xf32>
      %61 = vector.extract %60[0, 0, 0] : f32 from vector<1x1x1xf32>
      %cst_41 = arith.constant 1.250000e-01 : f32
      %62 = arith.mulf %61, %cst_41 : f32
      %63 = vector.broadcast %62 : f32 to vector<1x128xf32>
      %c0_42 = arith.constant 0 : index
      %c0_43 = arith.constant 0 : index
      %64 = vector.load %arg4[%c0_42, %c0_43] : memref<1x128xf32, #tpu.memory_space<vmem>>, vector<1x128xf32>
      tpu.vector_store %arg4[%c0_42, %c0_43], %63 {strides = array<i32>} : memref<1x128xf32, #tpu.memory_space<vmem>>, vector<1x128xf32>,
    } else {
    }
    return
  }
  func.func @transform_0(%arg0: i32, %arg1: i32) -> (i32, i32) {
    %c0_i32 = arith.constant 0 : i32
    %c0_i32_0 = arith.constant 0 : i32
    return %arg1, %c0_i32 : i32, i32
  }
  func.func @transform_1(%arg0: i32, %arg1: i32) -> (i32, i32) {
    %c0_i32 = arith.constant 0 : i32
    return %arg1, %arg0 : i32, i32
  }
  func.func @transform_2(%arg0: i32, %arg1: i32) -> (i32, i32) {
    %c0_i32 = arith.constant 0 : i32
    %c0_i32_0 = arith.constant 0 : i32
    return %c0_i32, %arg0 : i32, i32
  }
}

</mosaic_0001>

<bundles_post_ra>
// kernel: tpu_custom_call.1
= control target key start
LH: loop header
LB: loop body
LE: loop exit
PB: predicated region body
PF: predicated region fallthrough
CT: control target
= control target key end

     0   :  { %7 = vsyncpa [#allocation6], 0  ;;  %s591_s0 = inlined_call_operand.hbm [shape: f32[8,32], index: 0, kind: input, shape index: {}]   ;;  %s592_s1 = inlined_call_operand.hbm [shape: f32[8,128], index: 1, kind: input, shape index: {}]   ;;  %s593_s2 = inlined_call_operand.hbm [shape: f32[1,128], index: 2, kind: output, shape index: {}]  }
   0x1   :  { %8 = vsyncpa [#allocation9], 0 }
   0x2   :  { %9 = vsyncpa [#allocation7], 0  ;;  %s532_s9 = smov [#allocation5]   ;;  %s533_s11 = smov [#allocation8]  }
   0x3   :  { %s16_s10 = sshll.u32 %s532_s9, 4  ;;  %s26_s12 = sshll.u32 %s533_s11, 4  ;;  %s17_s10 = int_to_ptr.vmem [resolvable:$true] %s16_s10  ;;  %s27_s12 = int_to_ptr.vmem [resolvable:$true] %s26_s12 }
   0x4   :  { %s460_s15 = scalar_lea.hbm %s591_s0, 128 }
   0x5   :  { %p461_p0 = scmp.ne.s32.totalorder %s591_s0, %s460_s15  ;;  %p464_p1 = scmp.lt.u32.totalorder %s460_s15, %s591_s0 }
   0x7   :  { %p466_p2 = pnand %p464_p1, %p461_p0 }
   0x9   :  { %469 = shalt.err (!%p466_p2)
}
   0xa   :  { %s470_s20 = scalar_lea.vmem %s17_s10, 128  ;;  %p475_p4 = scmp.lt.s32.totalorder %s17_s10, %s17_s10 }
   0xb   :  { %p471_p3 = scmp.ne.s32.totalorder %s17_s10, %s470_s20  ;;  %p476_p5 = scmp.lt.s32.totalorder %s470_s20, %s470_s20 }
   0xd   :  { %p477_p6 = por %p476_p5, %p475_p4 }
   0xf   :  { %p478_p7 = pnand %p477_p6, %p471_p3 }
  0x11   :  { %481 = shalt.err (!%p478_p7)
}
  0x12   :  { %19 = dma.hbm_to_vmem [thread:$0]  %s591_s0, 128, %s17_s10, [#allocation6]  }
  0x13   :  { %s482_s25 = scalar_lea.hbm %s592_s1, 128 }
  0x14   :  { %p483_p8 = scmp.ne.s32.totalorder %s592_s1, %s482_s25  ;;  %p486_p9 = scmp.lt.u32.totalorder %s482_s25, %s592_s1 }
  0x16   :  { %p488_p10 = pnand %p486_p9, %p483_p8 }
  0x18   :  { %491 = shalt.err (!%p488_p10)
}
  0x19   :  { %s492_s30 = scalar_lea.vmem %s27_s12, 128  ;;  %p497_p12 = scmp.lt.s32.totalorder %s27_s12, %s27_s12 }
  0x1a   :  { %p493_p11 = scmp.ne.s32.totalorder %s27_s12, %s492_s30  ;;  %p498_p13 = scmp.lt.s32.totalorder %s492_s30, %s492_s30 }
  0x1c   :  { %p499_p0 = por %p498_p13, %p497_p12 }
  0x1e   :  { %p500_p1 = pnand %p499_p0, %p493_p11 }
  0x20   :  { %503 = shalt.err (!%p500_p1)
}
  0x21   :  { %29 = dma.hbm_to_vmem [thread:$0]  %s592_s1, 128, %s27_s12, [#allocation9]  }
  0x22   :  { %526 = dma.done.wait [#allocation6], 128  }
  0x23   :  { %527 = vsyncadd [#allocation6], 4294967168 }
  0x24   :  { %528 = dma.done.wait [#allocation9], 128  }
  0x25   :  { %529 = vsyncadd [#allocation9], 4294967168  ;;  %vm44_vm0 = vcmask 253952   ;;  %v534_v0 = vmov 0.0   ;;  %v47_v1 = vld [vmem:[#allocation5] sm:$0xff]  ;;  %v48_v2 = vld [vmem:[#allocation8] sm:$0xff] }
  0x26   :  { %45 = vst.msk [vmem:[#allocation3] sm:$0x1] %vm44_vm0, %v534_v0  ;;  %46 = vst [vmem:[#allocation4] sm:$0x1] %v534_v0  ;;  %v49_v3 = vmul.f32 %v47_v1, %v47_v1  ;;  %v50_v4 = vmul.f32 2e-06, %v47_v1  ;;  %v59_v5 = vmul.f32 %v48_v2, %v48_v2 }
  0x27   :  { %vm52_vm1 = vcmask 261120   ;;  %v60_v6 = vmul.f32 2e-06, %v48_v2  ;;  %vm279_vm2 = vcmask 1040384   ;;  %vm266_vm3 = vcmask 7168   ;;  %s535_s1 = smov [#allocation10]  }
  0x28   :  { %v51_v7 = vadd.f32 %v50_v4, %v49_v3  ;;  %vm103_vm4 = vcmask 64512   ;;  %s405_s4 = sshll.u32 %s535_s1, 4  ;;  %s406_s4 = int_to_ptr.vmem [resolvable:$true] %s405_s4 }
  0x29   :  { %v61_v9 = vadd.f32 %v60_v6, %v59_v5  ;;  %s504_s7 = scalar_lea.vmem %s406_s4, 16  ;;  %s508_s8 = scalar_lea.vmem %s406_s4, 32 }
  0x2a   :  { %v53_v8 = vsel %vm52_vm1, %v51_v7, 0.0  ;;  %p505_p2 = scmp.ne.s32.totalorder %s406_s4, %s504_s7  ;;  %p509_p3 = scmp.lt.s32.totalorder %s406_s4, %s406_s4 }
  0x2b   :  { %54 = vadd.xlane.f32.xlu0 %v53_v8  ;;  %p510_p4 = scmp.lt.s32.totalorder %s508_s8, %s504_s7 }
  0x2d   :  { %v209_v27 = vld [vmem:[#allocation3] sm:$0x1]  ;;  %v220_v32 = vld [vmem:[#allocation4] sm:$0x1]  ;;  %p511_p5 = por %p510_p4, %p509_p3 }
  0x2f   :  { %62 = vadd.xlane.f32.xlu0 %v61_v9  ;;  %p512_p6 = pnand %p511_p5, %p505_p2 }
  0xb8   :  { %v55_v10 = vpop.xlane.xlu0 %54 }
  0xb9   :  { %v56_v11 = vadd.f32 3.2e-11, %v55_v10 }
  0xbb   :  { %456 = vrsqrt.f32 %v56_v11 }
  0xbc   :  { %v63_v12 = vpop.xlane.xlu0 %62 }
  0xbd   :  { %v64_v13 = vadd.f32 6.4e-11, %v63_v12 }
  0xbf   :  { %458 = vrsqrt.f32 %v64_v13 }
  0xc5   :  { %v457_v14 = vpop.eup %456 }
  0xc6   :  { %v58_v15 = vmul.f32 %v457_v14, %v47_v1 }
  0xc8   :  { %v210_v16 = vsel %vm52_vm1, %v58_v15, 0.0 }
  0xc9   :  { %v459_v17 = vpop.eup %458  ;;  %v211_v18 = vrot.slane %v210_v16, 4 }
  0xca   :  { %v66_v19 = vmul.f32 %v459_v17, %v48_v2 }
  0xcb   :  { %v212_v20 = vadd.f32 %v211_v18, %v210_v16 }
  0xcc   :  { %434 = vmatprep.subr.mxu0 %v66_v19  ;;  %v221_v21 = vrot.slane %v66_v19, 4 }
  0xcd   :  { %v213_v22 = vrot.slane %v212_v20, 2  ;;  %435 = vmatpush3.msra.mxu0 %v66_v19 }
  0xce   :  { %v222_v23 = vadd.f32 %v221_v21, %v66_v19 }
  0xcf   :  { %v214_v24 = vadd.f32 %v213_v22, %v212_v20 }
  0xd0   :  { %v223_v25 = vrot.slane %v222_v23, 2 }
  0xd1   :  { %v215_v26 = vrot.slane %v214_v24, 1 }
  0xd2   :  { %v224_v28 = vadd.f32 %v223_v25, %v222_v23 }
  0xd3   :  { %v216_v29 = vadd.f32 %v215_v26, %v214_v24 }
  0xd4   :  { %v225_v30 = vrot.slane %v224_v28, 1 }
  0xd5   :  { %v217_v31 = vadd.f32 %v216_v29, %v209_v27 }
  0xd6   :  { %v226_v33 = vadd.f32 %v225_v30, %v224_v28 }
  0xd7   :  { %219 = vst.msk [vmem:[#allocation3] sm:$0x1] %vm44_vm0, %v217_v31 }
  0xd8   :  { %v227_v34 = vadd.f32 %v226_v33, %v220_v32 }
  0xda   :  { %228 = vst [vmem:[#allocation4] sm:$0x1] %v227_v34 }
  0xde   :  { %v232_v35 = vld [vmem:[#allocation3] sm:$0x1] }
  0xdf   :  { %234 = vxpose.xlu1.b32.start.end [1/1] (short) (narrow) %v232_v35, 32 }
  0xe1   :  { %v233_v36 = vld [vmem:[#allocation4] sm:$0x1] }
  0xe2   :  { %442 = vmatprep.subr.msk.mxu1 %vm279_vm2, %v233_v36 }
  0xe3   :  { %443 = vmatpush3.msk.msra.mxu1 %vm279_vm2, %v233_v36 }
  0xec   :  { %71 = vxpose.xlu1.b32.start.end [1/1] (short) (narrow) %v58_v15, 32 }
 0x15f   :  { %v250_v37 = vpop.trf.xlu1 }
 0x160   :  { %444 = vmatprep.mubr.msk.f32.mxu1 %vm266_vm3, %v250_v37 }
 0x163   :  { %v251_v38 = vpop.trf.xlu1 }
 0x164   :  { %445 = vmatmul.mubr.msk.f32.vlgmr.msra.gmra.mrb[0].mxu1 %vm266_vm3, %v251_v38 }
 0x167   :  { %v252_v39 = vpop.trf.xlu1 }
 0x168   :  { %447 = vmatprep.mubr.msk.f32.mxu1 %vm266_vm3, %v252_v39 }
 0x16b   :  { %v253_v40 = vpop.trf.xlu1 }
 0x16c   :  { %448 = vmatmul.mubr.msk.f32.gmra.mrb[2].mxu1 %vm266_vm3, %v253_v40 }
 0x16f   :  { %v87_v41 = vpop.trf.xlu1 }
 0x170   :  { %436 = vmatprep.mubr.msk.f32.mxu0 %vm103_vm4, %v87_v41 }
 0x173   :  { %v88_v42 = vpop.trf.xlu1 }
 0x174   :  { %437 = vmatmul.mubr.msk.f32.vlgmr.msra.gmra.mrb[0].mxu0 %vm103_vm4, %v88_v42 }
 0x177   :  { %v89_v43 = vpop.trf.xlu1 }
 0x178   :  { %439 = vmatprep.mubr.msk.f32.mxu0 %vm103_vm4, %v89_v43 }
 0x17b   :  { %v90_v44 = vpop.trf.xlu1 }
 0x17c   :  { %440 = vmatmul.mubr.msk.f32.gmra.mrb[2].mxu0 %vm103_vm4, %v90_v44 }
 0x237   :  { %v446_v45 = vpop.f32.mrb[0].mxu1 }
 0x238   :  { %v349_v46 = vpop.f32.mrb[1].mxu1  ;;  %v373_v49 = vmul.f32 0.125, %v446_v45 }
 0x239   :  { %v372_v50 = vmul.f32 0.125, %v349_v46 }
 0x23f   :  { %v449_v47 = vpop.f32.mrb[2].mxu1 }
 0x240   :  { %v359_v48 = vpop.f32.mrb[3].mxu1  ;;  %v375_v58 = vmul.f32 0.125, %v449_v47 }
 0x241   :  { %v374_v59 = vmul.f32 0.125, %v359_v48 }
 0x247   :  { %v438_v51 = vpop.f32.mrb[0].mxu0 }
 0x248   :  { %v377_v52 = vsub.f32 %v438_v51, %v373_v49  ;;  %v182_v53 = vpop.f32.mrb[1].mxu0 }
 0x249   :  { %v376_v54 = vsub.f32 %v182_v53, %v372_v50 }
 0x24a   :  { %v381_v55 = vmul.f32 %v377_v52, %v377_v52 }
 0x24b   :  { %v380_v56 = vmul.f32 %v376_v54, %v376_v54 }
 0x24d   :  { %v384_v57 = vadd.f32 %v381_v55, %v380_v56 }
 0x24f   :  { %v441_v60 = vpop.f32.mrb[2].mxu0 }
 0x250   :  { %v379_v61 = vsub.f32 %v441_v60, %v375_v58  ;;  %v192_v62 = vpop.f32.mrb[3].mxu0 }
 0x251   :  { %v378_v63 = vsub.f32 %v192_v62, %v374_v59 }
 0x252   :  { %v383_v1 = vmul.f32 %v379_v61, %v379_v61 }
 0x253   :  { %v382_v0 = vmul.f32 %v378_v63, %v378_v63 }
 0x255   :  { %v385_v2 = vadd.f32 %v384_v57, %v382_v0 }
 0x257   :  { %v386_v3 = vadd.f32 %v385_v2, %v383_v1 }
 0x259   :  { %387 = vadd.xlane.f32.xlu0 %v386_v3 }
 0x2e6   :  { %v388_v4 = vpop.xlane.xlu0 %387 }
 0x2e7   :  { %v389_v5 = vrot.slane %v388_v4, 4 }
 0x2e9   :  { %v390_v6 = vadd.f32 %v389_v5, %v388_v4 }
 0x2eb   :  { %v391_v7 = vrot.slane %v390_v6, 2 }
 0x2ed   :  { %v392_v8 = vadd.f32 %v391_v7, %v390_v6 }
 0x2ef   :  { %v393_v9 = vrot.slane %v392_v8, 1 }
 0x2f1   :  { %v394_v10 = vadd.f32 %v393_v9, %v392_v8 }
 0x2f3   :  { %450 = vpush %v394_v10 }
 0x324   :  { %s451_s5 = spop %450 }
 0x325   :  { %s396_s6 = smul.f32 0.125, %s451_s5 }
 0x327   :  { %v397_v11 = vstv %s396_s6 }
 0x328   :  { %398 = vst [vmem:[#allocation10] sm:$0x1] %v397_v11 }
 0x329   :  { %515 = shalt.err (!%p512_p6)
}
 0x32a   :  { %s516_s11 = scalar_lea.hbm %s593_s2, 16 }
 0x32b   :  { %p517_p7 = scmp.ne.s32.totalorder %s593_s2, %s516_s11  ;;  %p520_p8 = scmp.lt.u32.totalorder %s516_s11, %s593_s2 }
 0x32d   :  { %p522_p9 = pnand %p520_p8, %p517_p7 }
 0x32f   :  { %525 = shalt.err (!%p522_p9)
}
 0x330   :  { %408 = dma.vmem_to_hbm [thread:$0]  %s406_s4, 16, %s593_s2, [#allocation7]  }
 0x331   :  { %530 = dma.done.wait [#allocation7], 16  }
 0x332   :  { %531 = vsyncadd [#allocation7], 4294967280 }
 0x333   :  { %412 = vsyncpa [#allocation6], 1 }
 0x334   :  { %413 = vsyncpa [#allocation9], 1 }
 0x335   :  { %414 = vsyncpa [#allocation7], 1 }

</bundles_post_ra>
